<compile_context>
chip_gen: v7x
topology: tpu7x:2x2x1
jax: 0.10.0
libtpu: 0.0.40
codegen_flags: <defaults>
</compile_context>

<pallas_src>
import functools

import jax
import jax.numpy as jnp
from jax.experimental import pallas as pl
from jax.experimental.pallas import tpu as pltpu


def _make_divisible(v, divisor, min_value=None):
    if min_value is None:
        min_value = divisor
    new_v = max(min_value, int(v + divisor / 2) // divisor * divisor)
    if new_v < 0.9 * v:
        new_v += divisor
    return new_v


_LANE = 128


def _tpu_budget():
    """(x-block buffer budget, vmem_limit_bytes, tensorcores-per-chip hint)."""
    vmem = 64 * 1024 * 1024
    try:
        vmem = int(getattr(pltpu.get_tpu_info(), "vmem_capacity_bytes", vmem))
    except Exception:
        pass
    if vmem >= 128 * 1024 * 1024:
        # v5e / v6e: 128 MiB VMEM, single TensorCore -> spend most of it on big blocks.
        return 88 * 1024 * 1024, 104 * 1024 * 1024, 1
    # 64 MiB-class (v7x per-TC): conservative budget, 2 TensorCores share the chip.
    return 24 * 1024 * 1024, 40 * 1024 * 1024, 2


def _padded_per_image_bytes(c, hw, itemsize):
    """True VMEM footprint of one (C, HW) image slab after lane/sublane padding."""
    sub = 8 * max(1, 4 // itemsize)              # 8 rows per 32-bit sublane tile (16 for bf16)
    c_pad = pl.cdiv(c, sub) * sub
    hw_pad = pl.cdiv(hw, _LANE) * _LANE
    return c_pad * hw_pad * itemsize, c_pad, hw_pad


def _choose_bt(n, per_img, buf_budget, num_cores):
    """Images per grid step for the single-pass path."""
    # in + out blocks, each double-buffered => 4 resident copies of the block.
    bt = max(1, buf_budget // (4 * per_img))
    bt = min(bt, n)
    if num_cores > 1 and n > 1:
        # Multi-TC only: keep >= 2 grid steps so both TensorCores get work ...
        bt = min(bt, pl.cdiv(n, 2))
        # ... and prefer an even number of steps so neither core idles a whole step.
        steps = pl.cdiv(n, bt)
        if steps % 2 == 1 and bt > 1:
            bt = pl.cdiv(n, steps + 1)
    return int(bt)


def _choose_hw_tile(hw, c_pad, itemsize, buf_budget, num_cores):
    """Lane-multiple HW tile for the two-phase path."""
    hw_pad = pl.cdiv(hw, _LANE) * _LANE
    # Scale phase holds in + out tiles, double-buffered => 4 resident copies.
    max_tile = max(_LANE, (buf_budget // (4 * c_pad * itemsize)) // _LANE * _LANE)
    tile = min(max_tile, hw_pad)
    # Prefer >= 2 tiles per TensorCore so the grid pipelines (and both TCs work on v7x).
    min_tiles = 2 * num_cores
    if hw_pad >= min_tiles * _LANE:
        tile = min(tile, pl.cdiv(pl.cdiv(hw_pad, min_tiles), _LANE) * _LANE)
    return int(tile)


# --------------------------- single-pass kernel ---------------------------

def _se_kernel(x_ref, w1t_ref, b1_ref, w2t_ref, b2_ref, o_ref, *, inv_hw):
    # x_ref: (Bt, C, HW) block in native NCHW order (HW on lanes).
    # NOTE: when N % Bt != 0, the padded tail rows pool garbage, but pooling/FC/gate are
    # strictly per-image (no cross-row mixing) and those output rows are discarded, so the
    # real images are never contaminated.  Keep it that way if this kernel is refactored.
    pooled = jnp.sum(x_ref[...], axis=-1, dtype=jnp.float32) * inv_hw          # (Bt, C) f32

    # 1x1 conv reduce + ReLU, then 1x1 conv expand (row-form FCs, f32 accumulate).
    s = jnp.dot(pooled, w1t_ref[...], preferred_element_type=jnp.float32) + b1_ref[...]
    s = jnp.maximum(s, 0.0)
    e = jnp.dot(s, w2t_ref[...], preferred_element_type=jnp.float32) + b2_ref[...]

    # hard_sigmoid: relu6(e + 3) * (1/6)   (multiply by 1/6 == divide by 6 up to 1 ulp).
    gate = jnp.clip(e + 3.0, 0.0, 6.0) * (1.0 / 6.0)

    # Re-read x from VMEM and scale in the native dtype; gate lane-splats over HW.
    o_ref[...] = x_ref[...] * gate.astype(o_ref.dtype)[:, :, None]


# --------------------------- two-phase kernels ---------------------------

def _pool_gate_kernel(x_ref, w1t_ref, b1_ref, w2t_ref, b2_ref, gate_ref, acc_ref,
                      *, hw, hw_tile, inv_hw):
    t = pl.program_id(1)

    @pl.when(t == 0)
    def _():
        acc_ref[...] = jnp.zeros_like(acc_ref)

    x = x_ref[...]                                                   # (1, C, hw_tile)
    if hw % hw_tile != 0:
        # Static guard: mask padded tail lanes of the last tile so they don't pollute the sum.
        col = jax.lax.broadcasted_iota(jnp.int32, x.shape, 2)
        x = jnp.where(t * hw_tile + col < hw, x, jnp.zeros_like(x))
    acc_ref[...] += jnp.sum(x, axis=-1, dtype=jnp.float32)           # (1, C) f32

    @pl.when(t == pl.num_programs(1) - 1)
    def _():
        pooled = acc_ref[...] * inv_hw
        s = jnp.dot(pooled, w1t_ref[...], preferred_element_type=jnp.float32) + b1_ref[...]
        s = jnp.maximum(s, 0.0)
        e = jnp.dot(s, w2t_ref[...], preferred_element_type=jnp.float32) + b2_ref[...]
        gate = jnp.clip(e + 3.0, 0.0, 6.0) * (1.0 / 6.0)
        gate_ref[...] = gate[:, :, None]                             # (1, C, 1)


def _scale_kernel(x_ref, gate_ref, o_ref):
    # x_ref: (1, C, hw_tile); gate_ref: (1, C, 1) f32 -> lane-splat multiply in native dtype.
    o_ref[...] = x_ref[...] * gate_ref[...].astype(o_ref.dtype)


# --------------------------- wrapper ---------------------------

def squeeze_excite(x, w1, b1, w2, b2):
    """x: (N, C, H, W). w1: (Cr, C), b1: (Cr,), w2: (C, Cr), b2: (C,)."""
    N, C, H, W = x.shape
    Cr = w1.shape[0]
    HW = H * W

    # NCHW-native: flatten spatial only (free, contiguous) — HW becomes the lane axis.
    x3 = x.reshape(N, C, HW)
    w1t = jnp.transpose(w1)          # (C, Cr)   tiny one-time weight transposes
    w2t = jnp.transpose(w2)          # (Cr, C)
    b1r = b1.reshape(1, Cr)
    b2r = b2.reshape(1, C)

    itemsize = jnp.dtype(x.dtype).itemsize
    buf_budget, vmem_limit, num_cores = _tpu_budget()
    per_img, c_pad, hw_pad = _padded_per_image_bytes(C, HW, itemsize)

    x_bytes = N * C * HW * itemsize
    weight_bytes = (w1.size + b1.size + w2.size + b2.size) * jnp.dtype(w1.dtype).itemsize
    fc_flops = 4 * N * C * Cr

    compiler_params = pltpu.CompilerParams(
        dimension_semantics=("parallel",),
        vmem_limit_bytes=vmem_limit,
    )

    # Two-phase (pool+gate, then scale) when a single image block would overflow the budget,
    # or the batch is too small to keep the pipeline / both TensorCores busy and HW is big
    # enough that tiling it is worthwhile.
    use_two_phase = (4 * per_img > buf_budget) or (N < 2 * num_cores and HW >= 1024)
    # TODO(synk): if both C and HW are huge (not the case in GhostNet), a C-tiled variant of
    # the two-phase path would be needed; current tiling only splits HW.

    if not use_two_phase:
        Bt = _choose_bt(N, per_img, buf_budget, num_cores)
        grid = (pl.cdiv(N, Bt),)
        out3 = pl.pallas_call(
            functools.partial(_se_kernel, inv_hw=1.0 / HW),
            out_shape=jax.ShapeDtypeStruct((N, C, HW), x.dtype),
            grid_spec=pltpu.PrefetchScalarGridSpec(
                num_scalar_prefetch=0,
                grid=grid,
                in_specs=[
                    pl.BlockSpec((Bt, C, HW), lambda b: (b, 0, 0)),   # x block (Bt images)
                    pl.BlockSpec((C, Cr), lambda b: (0, 0)),          # conv_reduce weight^T
                    pl.BlockSpec((1, Cr), lambda b: (0, 0)),          # conv_reduce bias
                    pl.BlockSpec((Cr, C), lambda b: (0, 0)),          # conv_expand weight^T
                    pl.BlockSpec((1, C), lambda b: (0, 0)),           # conv_expand bias
                ],
                out_specs=pl.BlockSpec((Bt, C, HW), lambda b: (b, 0, 0)),
            ),
            compiler_params=compiler_params,
            cost_estimate=pl.CostEstimate(
                flops=int(fc_flops + 4 * N * C * HW),
                transcendentals=0,
                bytes_accessed=int(2 * x_bytes + weight_bytes),
            ),
        )(x3, w1t, b1r, w2t, b2r)
        return out3.reshape(N, C, H, W)

    # ---------------- two-phase HW-tiled path ----------------
    hw_tile = _choose_hw_tile(HW, c_pad, itemsize, buf_budget, num_cores)
    T = pl.cdiv(HW, hw_tile)

    # Phase 1: pool over HW (reduction axis, last in grid) + gate.  Gate stored as (N, C, 1)
    # so phase 2 can broadcast it over lanes directly.
    gate = pl.pallas_call(
        functools.partial(_pool_gate_kernel, hw=HW, hw_tile=hw_tile, inv_hw=1.0 / HW),
        out_shape=jax.ShapeDtypeStruct((N, C, 1), jnp.float32),
        grid_spec=pltpu.PrefetchScalarGridSpec(
            num_scalar_prefetch=0,
            grid=(N, T),
            in_specs=[
                pl.BlockSpec((1, C, hw_tile), lambda b, t: (b, 0, t)),
                pl.BlockSpec((C, Cr), lambda b, t: (0, 0)),
                pl.BlockSpec((1, Cr), lambda b, t: (0, 0)),
                pl.BlockSpec((Cr, C), lambda b, t: (0, 0)),
                pl.BlockSpec((1, C), lambda b, t: (0, 0)),
            ],
            out_specs=pl.BlockSpec((1, C, 1), lambda b, t: (b, 0, 0)),
            scratch_shapes=[pltpu.VMEM((1, C), jnp.float32)],
        ),
        compiler_params=pltpu.CompilerParams(
            dimension_semantics=("parallel", "arbitrary"),
            vmem_limit_bytes=vmem_limit,
        ),
        cost_estimate=pl.CostEstimate(
            flops=int(N * C * HW + fc_flops),
            transcendentals=0,
            bytes_accessed=int(x_bytes + weight_bytes + N * C * 4),
        ),
    )(x3, w1t, b1r, w2t, b2r)

    # Phase 2: fully-parallel streaming scale (both grid axes parallel -> pipelined, and
    # shardable across both TensorCores on v7x even at N=1).
    out3 = pl.pallas_call(
        _scale_kernel,
        out_shape=jax.ShapeDtypeStruct((N, C, HW), x.dtype),
        grid_spec=pltpu.PrefetchScalarGridSpec(
            num_scalar_prefetch=0,
            grid=(N, T),
            in_specs=[
                pl.BlockSpec((1, C, hw_tile), lambda b, t: (b, 0, t)),
                pl.BlockSpec((1, C, 1), lambda b, t: (b, 0, 0)),
            ],
            out_specs=pl.BlockSpec((1, C, hw_tile), lambda b, t: (b, 0, t)),
        ),
        compiler_params=pltpu.CompilerParams(
            dimension_semantics=("parallel", "parallel"),
            vmem_limit_bytes=vmem_limit,
        ),
        cost_estimate=pl.CostEstimate(
            flops=int(N * C * HW),
            transcendentals=0,
            bytes_accessed=int(2 * x_bytes + N * C * 4),
        ),
    )(x3, gate)
    return out3.reshape(N, C, H, W)


def _reference(x, w1, b1, w2, b2):
    pooled = jnp.mean(x, axis=(2, 3), keepdims=True)                       # (N,C,1,1)
    s = jnp.einsum('rc,ncij->nrij', w1, pooled) + b1[None, :, None, None]
    s = jnp.maximum(s, 0.0)
    e = jnp.einsum('cr,nrij->ncij', w2, s) + b2[None, :, None, None]
    gate = jnp.clip(e + 3.0, 0.0, 6.0) / 6.0
    return x * gate


if __name__ == "__main__":
    def run_case(key, N, C, H, W):
        se_ratio, divisor = 0.25, 4
        Cr = _make_divisible(C * se_ratio, divisor)
        kx, kw1, kb1, kw2, kb2 = jax.random.split(key, 5)
        x = jax.random.normal(kx, (N, C, H, W), dtype=jnp.float32)
        # Conv2d(in_chs, reduced_chs, 1) weight (Cr, C, 1, 1) -> stored (Cr, C)
        w1 = jax.random.normal(kw1, (Cr, C), dtype=jnp.float32) * 0.1
        b1 = jax.random.normal(kb1, (Cr,), dtype=jnp.float32) * 0.1
        # Conv2d(reduced_chs, in_chs, 1) weight (C, Cr, 1, 1) -> stored (C, Cr)
        w2 = jax.random.normal(kw2, (C, Cr), dtype=jnp.float32) * 0.1
        b2 = jax.random.normal(kb2, (C,), dtype=jnp.float32) * 0.1

        out = squeeze_excite(x, w1, b1, w2, b2)
        jax.block_until_ready(out)
        ref = _reference(x, w1, b1, w2, b2)
        assert out.shape == ref.shape, "shape mismatch vs reference"
        assert jnp.allclose(out, ref, atol=1e-5, rtol=1e-5), "mismatch vs reference"

    key = jax.random.PRNGKey(0)
    k1, k2 = jax.random.split(key)
    run_case(k1, 2, 4, 16, 16)   # single-pass batched path
    run_case(k2, 1, 8, 40, 40)   # two-phase HW-tiled path (N=1, large HW)

    print("KERNEL_OK")
</pallas_src>

<mosaic_0001>
module attributes {stable_mosaic.version = 11 : i64} {
  func.func @_se_kernel(%arg0: i32, %arg1: memref<1x4x256xf32, #tpu.memory_space<vmem>>, %arg2: memref<4x4xf32, #tpu.memory_space<vmem>>, %arg3: memref<1x4xf32, #tpu.memory_space<vmem>>, %arg4: memref<4x4xf32, #tpu.memory_space<vmem>>, %arg5: memref<1x4xf32, #tpu.memory_space<vmem>>, %arg6: memref<1x4x256xf32, #tpu.memory_space<vmem>>) attributes {dimension_semantics = [#tpu.dimension_semantics<parallel>], iteration_bounds = array<i64: 2>, scalar_prefetch = 0 : i64, scratch_operands = 0 : i64, tpu.core_type = #tpu.core_type<tc>, window_params = [{transform_indices = @transform_0, window_bounds = array<i64: 1, 4, 256>}, {pipeline_mode = #tpu.pipeline_mode<synchronous>, transform_indices = @transform_1, window_bounds = array<i64: 4, 4>}, {pipeline_mode = #tpu.pipeline_mode<synchronous>, transform_indices = @transform_2, window_bounds = array<i64: 1, 4>}, {pipeline_mode = #tpu.pipeline_mode<synchronous>, transform_indices = @transform_3, window_bounds = array<i64: 4, 4>}, {pipeline_mode = #tpu.pipeline_mode<synchronous>, transform_indices = @transform_4, window_bounds = array<i64: 1, 4>}, {transform_indices = @transform_5, window_bounds = array<i64: 1, 4, 256>}]} {
    %c0 = arith.constant 0 : index
    %c0_0 = arith.constant 0 : index
    %c0_1 = arith.constant 0 : index
    %0 = vector.load %arg1[%c0, %c0_0, %c0_1] : memref<1x4x256xf32, #tpu.memory_space<vmem>>, vector<1x4x256xf32>
    %cst = arith.constant dense<0.000000e+00> : vector<1x4xf32>
    %1 = vector.multi_reduction <add>, %0, %cst [2] : vector<1x4x256xf32> to vector<1x4xf32>
    %cst_2 = arith.constant 3.906250e-03 : f32
    %2 = vector.broadcast %cst_2 : f32 to vector<1x4xf32>
    %3 = arith.mulf %1, %2 : vector<1x4xf32>
    %c0_3 = arith.constant 0 : index
    %c0_4 = arith.constant 0 : index
    %4 = vector.load %arg2[%c0_3, %c0_4] : memref<4x4xf32, #tpu.memory_space<vmem>>, vector<4x4xf32>
    %cst_5 = arith.constant dense<0.000000e+00> : vector<1x4xf32>
    %5 = tpu.matmul %3, %4, %cst_5 {dimension_numbers = #tpu.dot_dimension_numbers<[1], [0], [0], [1], [0, 0, 1, 1], [], []>} : vector<1x4xf32>, vector<4x4xf32>, vector<1x4xf32> -> vector<1x4xf32>
    %c0_6 = arith.constant 0 : index
    %c0_7 = arith.constant 0 : index
    %6 = vector.load %arg3[%c0_6, %c0_7] : memref<1x4xf32, #tpu.memory_space<vmem>>, vector<1x4xf32>
    %7 = arith.addf %5, %6 : vector<1x4xf32>
    %cst_8 = arith.constant 0.000000e+00 : f32
    %8 = vector.broadcast %cst_8 : f32 to vector<1x4xf32>
    %9 = arith.maximumf %7, %8 : vector<1x4xf32>
    %c0_9 = arith.constant 0 : index
    %c0_10 = arith.constant 0 : index
    %10 = vector.load %arg4[%c0_9, %c0_10] : memref<4x4xf32, #tpu.memory_space<vmem>>, vector<4x4xf32>
    %cst_11 = arith.constant dense<0.000000e+00> : vector<1x4xf32>
    %11 = tpu.matmul %9, %10, %cst_11 {dimension_numbers = #tpu.dot_dimension_numbers<[1], [0], [0], [1], [0, 0, 1, 1], [], []>} : vector<1x4xf32>, vector<4x4xf32>, vector<1x4xf32> -> vector<1x4xf32>
    %c0_12 = arith.constant 0 : index
    %c0_13 = arith.constant 0 : index
    %12 = vector.load %arg5[%c0_12, %c0_13] : memref<1x4xf32, #tpu.memory_space<vmem>>, vector<1x4xf32>
    %13 = arith.addf %11, %12 : vector<1x4xf32>
    %cst_14 = arith.constant 3.000000e+00 : f32
    %14 = vector.broadcast %cst_14 : f32 to vector<1x4xf32>
    %15 = arith.addf %13, %14 : vector<1x4xf32>
    %cst_15 = arith.constant 0.000000e+00 : f32
    %cst_16 = arith.constant 6.000000e+00 : f32
    %16 = vector.broadcast %cst_15 : f32 to vector<1x4xf32>
    %17 = arith.maximumf %16, %15 : vector<1x4xf32>
    %18 = vector.broadcast %cst_16 : f32 to vector<1x4xf32>
    %19 = arith.minimumf %18, %17 : vector<1x4xf32>
    %cst_17 = arith.constant 0.166666672 : f32
    %20 = vector.broadcast %cst_17 : f32 to vector<1x4xf32>
    %21 = arith.mulf %19, %20 : vector<1x4xf32>
    %c0_18 = arith.constant 0 : index
    %c0_19 = arith.constant 0 : index
    %c0_20 = arith.constant 0 : index
    %22 = vector.load %arg1[%c0_18, %c0_19, %c0_20] : memref<1x4x256xf32, #tpu.memory_space<vmem>>, vector<1x4x256xf32>
    %23 = vector.shape_cast %21 : vector<1x4xf32> to vector<1x4x1xf32>
    %24 = vector.broadcast %23 : vector<1x4x1xf32> to vector<1x4x256xf32>
    %25 = arith.mulf %22, %24 : vector<1x4x256xf32>
    %c0_21 = arith.constant 0 : index
    %c0_22 = arith.constant 0 : index
    %c0_23 = arith.constant 0 : index
    %26 = vector.load %arg6[%c0_21, %c0_22, %c0_23] : memref<1x4x256xf32, #tpu.memory_space<vmem>>, vector<1x4x256xf32>
    tpu.vector_store %arg6[%c0_21, %c0_22, %c0_23], %25 {strides = array<i32>} : memref<1x4x256xf32, #tpu.memory_space<vmem>>, vector<1x4x256xf32>,
    return
  }
  func.func @transform_0(%arg0: i32) -> (i32, i32, i32) {
    %c0_i32 = arith.constant 0 : i32
    %c0_i32_0 = arith.constant 0 : i32
    %c0_i32_1 = arith.constant 0 : i32
    return %arg0, %c0_i32, %c0_i32_0 : i32, i32, i32
  }
  func.func @transform_1(%arg0: i32) -> (i32, i32) {
    %c0_i32 = arith.constant 0 : i32
    %c0_i32_0 = arith.constant 0 : i32
    %c0_i32_1 = arith.constant 0 : i32
    return %c0_i32, %c0_i32_0 : i32, i32
  }
  func.func @transform_2(%arg0: i32) -> (i32, i32) {
    %c0_i32 = arith.constant 0 : i32
    %c0_i32_0 = arith.constant 0 : i32
    %c0_i32_1 = arith.constant 0 : i32
    return %c0_i32, %c0_i32_0 : i32, i32
  }
  func.func @transform_3(%arg0: i32) -> (i32, i32) {
    %c0_i32 = arith.constant 0 : i32
    %c0_i32_0 = arith.constant 0 : i32
    %c0_i32_1 = arith.constant 0 : i32
    return %c0_i32, %c0_i32_0 : i32, i32
  }
  func.func @transform_4(%arg0: i32) -> (i32, i32) {
    %c0_i32 = arith.constant 0 : i32
    %c0_i32_0 = arith.constant 0 : i32
    %c0_i32_1 = arith.constant 0 : i32
    return %c0_i32, %c0_i32_0 : i32, i32
  }
  func.func @transform_5(%arg0: i32) -> (i32, i32, i32) {
    %c0_i32 = arith.constant 0 : i32
    %c0_i32_0 = arith.constant 0 : i32
    %c0_i32_1 = arith.constant 0 : i32
    return %arg0, %c0_i32, %c0_i32_0 : i32, i32, i32
  }
}

</mosaic_0001>

<bundles_post_ra>
// kernel: tpu_custom_call.1
= control target key start
LH: loop header
LB: loop body
LE: loop exit
PB: predicated region body
PF: predicated region fallthrough
CT: control target
= control target key end

     0   :  { %10 = vsyncpa [#allocation3], 0  ;;  %s1027_s0 = inlined_call_operand.hbm [shape: f32[2,4,256], index: 0, kind: input, shape index: {}]   ;;  %s1028_s1 = inlined_call_operand.hbm [shape: f32[4,4], index: 1, kind: input, shape index: {}]   ;;  %s1029_s2 = inlined_call_operand.vmem [shape: f32[1,4], index: 2, kind: input, shape index: {}]   ;;  %s1030_s3 = inlined_call_operand.vmem [shape: f32[4,4], index: 3, kind: input, shape index: {}]   ;;  %s1031_s4 = inlined_call_operand.vmem [shape: f32[1,4], index: 4, kind: input, shape index: {}]   ;;  %s1032_s5 = inlined_call_operand.hbm [shape: f32[2,4,256], index: 5, kind: output, shape index: {}]  }
   0x1   :  { %12 = vsyncpa [#allocation3 + $0x1], 0 }
   0x2   :  { %13 = vsyncpa [#allocation6], 0 }
   0x3   :  { %14 = vsyncpa [#allocation4], 0 }
   0x4   :  { %16 = vsyncpa [#allocation4 + $0x1], 0  ;;  %s809_s18 = smov 0   ;;  %s811_s19 = smov 0  }
   0x5   :  { %s813_s20 = smov 0   ;;  %s815_s21 = smov 0  }
   0x6 LB: > { %s830_s22 = sadd.s32 4294967295, %s771_s21   ;;  %s546_s23 = sadd.s32 4294967294, %s771_s21   ;;  %s771_s21 = sphi %s815_s21, %s1056_s21   ;;  %s767_s20 = sphi %s813_s20, %s1055_s20   ;;  %s763_s19 = sphi %s811_s19, %s1054_s19   ;;  %s759_s18 = sphi %s809_s18, %s1053_s18  }
   0x7   : > { %p42_p0 = scmp.ne.s32.totalorder %s763_s19, %s759_s18  ;;  %p1033_p1 = scmp.eq.s32.totalorder %s830_s22, 0 }
   0x8   : > { %p156_p3 = scmp.eq.s32.totalorder %s546_s23, 1  ;;  %p547_p5 = scmp.ge.s32.totalorder %s771_s21, 1 }
   0x9   : > { %p839_p4 = por %p1033_p1, %p42_p0  ;;  %p163_p7 = scmp.lt.s32.totalorder %s771_s21, 3 }
   0xa   : > { %p844_p6 = por %p156_p3, %p42_p0  ;;  %s773_s27 = smov [#allocation5]  }
   0xb   : > { %s1036_s24 = scalar_select %p839_p4, 1, 0 }
   0xc   : > { %s1037_s25 = scalar_select %p844_p6, 1, 0 }
   0xd   : > { %p849_p8 = pnand %p547_p5, %p163_p7  ;;  %s176_s28 = sshll.u32 %s773_s27, 4  ;;  %s177_s28 = int_to_ptr.vmem [resolvable:$true] %s176_s28 }
   0xe   : > { %s857_s29 = sadd.s32 1, %s771_s21   ;;  %s29_s8 = sadd.s32 1, %s767_s20 }
   0xf   : > { %s1038_s26 = scalar_select %p849_p8, 1, 0 }
  0x10   : > { %p590_p10 = pneg %p849_p8  ;;  %s26_s6 = ssub.s32 %s771_s21, %s857_s29 }
  0x11   : > { %p867_p12 = scmp.eq.s32.totalorder %s26_s6, 0  ;;  %s643_s11 = scalar_lea.hbm %s1028_s1, 64 }
  0x12   : > { %p861_p11 = pnand %p590_p10, %p1033_p1  ;;  %p644_p0 = scmp.ne.s32.totalorder %s1028_s1, %s643_s11 }
  0x13   : > { %s1040_s7 = scalar_select %p867_p12, 1, 0 }
  0x14   : > { %p645_p3 = pneg %p861_p11  ;;  %p650_p10 = scmp.lt.u32.totalorder %s643_s11, %s1028_s1 }
  0x16   : > { %p646_p5 = pnand %p645_p3, %p644_p0 }
  0x18   : > { %p647_p7 = pneg %p646_p5 }
  0x1a   : > { %p652_p9 = pnand %p650_p10, %p647_p7 }
  0x1c   : > { %655 = shalt.err (!%p652_p9)
}
  0x1d   : > { %s656_s16 = scalar_lea.vmem %s177_s28, 64  ;;  %p664_p6 = scmp.lt.s32.totalorder %s177_s28, %s177_s28 }
  0x1e   : > { %p657_p1 = scmp.ne.s32.totalorder %s177_s28, %s656_s16  ;;  %p665_p4 = scmp.lt.s32.totalorder %s656_s16, %s656_s16 }
  0x20   : > { %p659_p2 = pnand %p657_p1, %p645_p3  ;;  %p666_p8 = por %p665_p4, %p664_p6 }
  0x22   : > { %p660_p13 = pneg %p659_p2 }
  0x24   : > { %p667_p12 = pnand %p666_p8, %p660_p13 }
  0x26   : > { %670 = shalt.err (!%p667_p12)
}
  0x27   : > { %593 = dma.hbm_to_vmem [thread:$0]  (!%p861_p11), %s1028_s1, 64, %s177_s28, [#allocation6]  }
  0x28   : > { %p1041_p1 = scmp.ne.s32.totalorder %s1040_s7, 0  ;;  %p37_p2 = scmp.eq.s32.totalorder %s771_s21, 0 }
  0x29   : > { %p1042_p4 = scmp.ne.s32.totalorder %s767_s20, %s763_s19  ;;  %p1043_p6 = scmp.eq.s32.totalorder %s830_s22, 1 }
  0x2a   : > { %s893_s27 = scalar_select %p1041_p1, %s767_s20, %s29_s8  }
  0x2b   : > { %p901_p8 = por %p1043_p6, %p1042_p4  ;;  %p603_p9 = scmp.lt.s32.totalorder %s771_s21, 2 }
  0x2c   : > { %s196_s6 = sand.u32 1, %s767_s20   ;;  %p1045_p12 = pmov %p1042_p4 }
  0x2d   : > { %s550_s9 = sshll.u32 %s196_s6, 3  ;;  %s566_s10 = sshll.u32 %s771_s21, 7 }
  0x2e   : > { %p38_p13 = por %p37_p2, %p1045_p12  ;;  %s914_s28 = scalar_lea.hbm %s1027_s0, %s566_s10 }
  0x2f   : > { %s200_s7 = scalar_lea.vmem [#allocation2], %s550_s9  ;;  %s197_s14 = scalar_lea.sflag [#allocation3], %s196_s6 }
  0x30   : > { %s208_s8 = sshll.u32 %s200_s7, 4  ;;  %p916_p11 = pnand %p603_p9, %p38_p13  ;;  %s920_s8 = int_to_ptr.vmem [resolvable:$true] %s208_s8 }
  0x31   : > { %s671_s15 = scalar_lea.hbm %s914_s28, 128  ;;  %s676_s23 = scalar_lea.hbm %s1027_s0, 256 }
  0x32   : > { %p672_p0 = scmp.ne.s32.totalorder %s914_s28, %s671_s15  ;;  %p673_p3 = pneg %p916_p11 }
  0x33   : > { %p677_p10 = scmp.lt.u32.totalorder %s914_s28, %s1027_s0  ;;  %p678_p1 = scmp.lt.u32.totalorder %s676_s23, %s671_s15 }
  0x34   : > { %p674_p5 = pnand %p673_p3, %p672_p0  ;;  %p680_p4 = scmp.lt.u32.totalorder %s671_s15, %s914_s28 }
  0x35   : > { %p679_p2 = por %p678_p1, %p677_p10 }
  0x36   : > { %p675_p7 = pneg %p674_p5 }
  0x37   : > { %p681_p6 = por %p680_p4, %p679_p2 }
  0x39   : > { %p682_p9 = pnand %p681_p6, %p675_p7 }
  0x3b   : > { %685 = shalt.err (!%p682_p9)
}
  0x3c   : > { %s686_s6 = scalar_lea.vmem %s920_s8, 128  ;;  %s774_s11 = smov [#allocation2]  }
  0x3d   : > { %p687_p12 = scmp.ne.s32.totalorder %s920_s8, %s686_s6  ;;  %s691_s12 = sshll.u32 %s774_s11, 4  ;;  %s692_s12 = int_to_ptr.vmem [resolvable:$false] %s691_s12 }
  0x3e   : > { %s693_s7 = scalar_lea.vmem %s692_s12, 256  ;;  %p694_p5 = scmp.lt.s32.totalorder %s920_s8, %s692_s12 }
  0x3f   : > { %p689_p13 = pnand %p687_p12, %p673_p3  ;;  %p695_p10 = scmp.lt.s32.totalorder %s693_s7, %s686_s6 }
  0x41   : > { %p690_p0 = pneg %p689_p13  ;;  %p696_p1 = por %p695_p10, %p694_p5 }
  0x43   : > { %p697_p2 = pnand %p696_p1, %p690_p0 }
  0x45   : > { %700 = shalt.err (!%p697_p2)
}
  0x46   : > { %597 = dma.hbm_to_vmem [thread:$0]  (!%p916_p11), %s914_s28, 128, %s920_s8, %s197_s14  }
  0x47   : > { %p1047_p7 = scmp.ne.s32.totalorder %s1038_s26, 0 }
  0x48   : > { %s950_s15 = sand.u32 (!%p1047_p7), 1, %s763_s19   ;;  %p1048_p3 = scmp.ne.s32.totalorder (!%p1047_p7), %s1036_s24, 0 }
  0x49   : > { %217 = sbr.rel (%p1047_p7) target bundleno = 809 (0x329), region = 40  ;;  %s554_s16 = sshll.u32 (!%p1047_p7), %s950_s15, 3 }
  0x4a   : > { %s220_s17 = scalar_lea.sflag (!%p1047_p7), [#allocation3], %s950_s15  ;;  %s223_s23 = scalar_lea.vmem (!%p1047_p7), [#allocation2], %s554_s16 }
  0x50   : > { %746 = dma.done.wait (%p1048_p3), %s220_s17, 128  }
  0x51   : > { %748 = vsyncadd (%p1048_p3), %s220_s17, 4294967168  ;;  %p1049_p11 = scmp.eq.s32.totalorder %s830_s22, 0 }
  0x53   : > { %750 = dma.done.wait (%p1049_p11), [#allocation6], 64   ;;  %p1050_p4 = pmov %p1049_p11 }
  0x54   : > { %vm258_vm0 = vcmask 1043456   ;;  %v254_v0 = vld [vmem:[%s223_s23] sm:$0xff]  ;;  %v775_v5 = vmov 0.0   ;;  %v265_v6 = vld [vmem:[#allocation5] sm:$0xf]  ;;  %vm776_vm1 = vmmov 0   ;;  %v268_v7 = vlaneseq }
  0x55   : > { %752 = vsyncadd (%p1050_p4), [#allocation6], 4294967232  ;;  %v256_v1 = vcombine.high %v254_v0, %v254_v0  ;;  %v259_v2 = vsel %vm258_vm0, %v254_v0, 0.0  ;;  %572 = vmatprep.subr.mxu0 %v775_v5  ;;  %577 = vmatprep.subr.mxu1 %v775_v5  ;;  %vm274_vm2 = vcmask 31744   ;;  %v351_v14 = vld [vmem:[%s1030_s3] sm:$0xf] }
  0x56   : > { %573 = vmatpush3.msk.msra.mxu0 %vm258_vm0, %v265_v6  ;;  %574 = vmatprep.mubr.msk.f32.mxu0 %vm776_vm1, %v775_v5  ;;  %v269_v8 = vand.u32 127, %v268_v7  ;;  %v271_v9 = vshrl.u32 %v268_v7, 7  ;;  %v266_v15 = vld [vmem:[%s1029_s2] sm:$0x1]  ;;  %v777_v30 = vmov 839922192  }
  0x57   : > { %v260_v3 = vsel %vm258_vm0, %v256_v1, 0.0  ;;  %579 = vmatprep.mubr.msk.f32.mxu1 %vm776_vm1, %v775_v5  ;;  %578 = vmatpush3.msk.msra.mxu1 %vm258_vm0, %v351_v14  ;;  %v352_v20 = vld [vmem:[%s1031_s4] sm:$0x1]  ;;  %v442_v31 = vunpack.c.l.s4 %v777_v30  ;;  %s567_s9 = sshll.u32 %s830_s22, 7  ;;  %s253_s10 = scalar_lea.vmem [#allocation7], %s554_s16 }
  0x58   : > { %v261_v4 = vadd.f32 %v260_v3, %v259_v2  ;;  %v272_v10 = vsub.s32 %v269_v8, %v271_v9  ;;  %v435_v27 = vsub.s32 0, %v271_v9  ;;  %s466_s6 = sshll.u32 %s253_s10, 4  ;;  %s983_s7 = scalar_lea.hbm %s1032_s5, %s567_s9  ;;  %s985_s6 = int_to_ptr.vmem [resolvable:$true] %s466_s6 }
  0x59   : > { %v443_v32 = vunpack.c.0.s8 %v442_v31  ;;  %s452_s17 = scalar_lea.sflag [#allocation4], %s950_s15  ;;  %s701_s23 = scalar_lea.vmem %s985_s6, 128 }
  0x5a   : > { %262 = vadd.xlane.f32.xlu0 %v261_v4  ;;  %p702_p6 = scmp.ne.s32.totalorder %s985_s6, %s701_s23  ;;  %s778_s22 = smov [#allocation7]  }
  0x5b   : > { %v446_v33 = vsub.s32 %v443_v32, %v271_v9  ;;  %s705_s16 = sshll.u32 %s778_s22, 4  ;;  %s706_s16 = int_to_ptr.vmem [resolvable:$false] %s705_s16 }
  0x5c   : > { %p703_p9 = pnand %p702_p6, %p901_p8  ;;  %s707_s24 = scalar_lea.vmem %s706_s16, 256 }
  0x5d   : > { %p708_p13 = scmp.lt.s32.totalorder %s985_s6, %s706_s16  ;;  %p709_p0 = scmp.lt.s32.totalorder %s707_s24, %s701_s23 }
  0x5e   : > { %p704_p12 = pneg %p703_p9 }
  0x5f   : > { %p710_p5 = por %p709_p0, %p708_p13 }
  0x61   : > { %p711_p10 = pnand %p710_p5, %p704_p12 }
  0xe7   : > { %v263_v11 = vpop.xlane.xlu0 %262 }
  0xe8   : > { %v264_v12 = vmul.f32 0.00390625, %v263_v11 }
  0xea   : > { %v273_v13 = vrot.slane %v264_v12, %v272_v10 }
  0xec   : > { %575 = vmatmul.mubr.msk.f32.vlgmr.msra.gmra.mrb[0].mxu0 %vm274_vm2, %v273_v13 }
 0x1bf   : > { %v346_v16 = vpop.f32.mrb[0].mxu0 }
 0x1c0   : > { %v347_v17 = vadd.f32 %v346_v16, %v266_v15  ;;  %v576_v18 = vpop.f32.mrb[1].mxu0 }
 0x1c2   : > { %v350_v19 = vmax.f32 %v347_v17, 0.0 }
 0x1c4   : > { %580 = vmatmul.mubr.msk.f32.vlgmr.msra.gmra.mrb[0].mxu1 %vm274_vm2, %v350_v19 }
 0x297   : > { %v425_v21 = vpop.f32.mrb[0].mxu1 }
 0x298   : > { %v426_v22 = vadd.f32 %v425_v21, %v352_v20  ;;  %v581_v23 = vpop.f32.mrb[1].mxu1 }
 0x29a   : > { %v429_v24 = vadd.f32 3.0, %v426_v22 }
 0x29c   : > { %v430_v25 = vmax.f32 %v429_v24, 0.0 }
 0x29e   : > { %v431_v26 = vmin.f32 %v430_v25, 6.0 }
 0x2a0   : > { %v432_v28 = vmul.f32 0.16666667, %v431_v26 }
 0x2a2   : > { %v436_v29 = vrot.slane %v432_v28, %v435_v27 }
 0x2a4   : > { %438 = vbcast.lane.b32.xlu0 %v436_v29, 256 }
 0x316   : > { %v439_v34 = vpop.permute.xlu0 %438 }
 0x317   : > { %v447_v35 = vrot.slane %v439_v34, %v446_v33 }
 0x319   : > { %v449_v36 = vmul.f32 %v447_v35, %v254_v0 }
 0x31b   : > { %450 = vst [vmem:[%s253_s10] sm:$0xff] %v449_v36 }
 0x31c   : > { %714 = shalt.err (!%p711_p10)
}
 0x31d   : > { %s715_s15 = scalar_lea.hbm %s983_s7, 128  ;;  %s719_s8 = scalar_lea.hbm %s1032_s5, 256 }
 0x31e   : > { %p716_p1 = scmp.ne.s32.totalorder %s983_s7, %s715_s15  ;;  %p720_p3 = scmp.lt.u32.totalorder %s983_s7, %s1032_s5 }
 0x31f   : > { %p721_p11 = scmp.lt.u32.totalorder %s719_s8, %s715_s15  ;;  %p723_p6 = scmp.lt.u32.totalorder %s715_s15, %s983_s7 }
 0x320   : > { %p717_p2 = pnand %p716_p1, %p901_p8 }
 0x321   : > { %p722_p4 = por %p721_p11, %p720_p3 }
 0x322   : > { %p718_p7 = pneg %p717_p2 }
 0x323   : > { %p724_p9 = por %p723_p6, %p722_p4 }
 0x325   : > { %p725_p12 = pnand %p724_p9, %p718_p7 }
 0x327   : > { %728 = shalt.err (!%p725_p12)
}
 0x328   : > { %588 = dma.vmem_to_hbm [thread:$0]  (%p901_p8), %s985_s6, 128, %s983_s7, %s452_s17  }
 0x329 PF: > { %s478_s9 = sand.u32 1, %s759_s18   ;;  %p1051_p13 = scmp.ne.s32.totalorder %s1037_s25, 0 }
 0x32a   : > { %p1052_p0 = scmp.ge.s32.totalorder %s771_s21, 2  ;;  %s479_s10 = scalar_lea.sflag [#allocation4], %s478_s9 }
 0x32c   : > { %p599_p5 = pnand %p1052_p0, %p1051_p13 }
 0x32e   : > { %754 = dma.done.wait (!%p599_p5), %s479_s10, 128  }
 0x32f   : > { %756 = vsyncadd (!%p599_p5), %s479_s10, 4294967168  ;;  %p19_p10 = scmp.ge.s32.totalorder %s857_s29, 4   ;;  %s1053_s18 = smov %s763_s19 }
 0x330   : > { %s1054_s19 = smov %s767_s20  ;;  %s1055_s20 = smov %s893_s27 }
 0x331   : > { %s1056_s21 = smov %s857_s29  ;;  %21 = sbr.rel (!%p19_p10) target bundleno = 6 (0x6), region = 89 }
 0x338   :  { %484 = vsyncpa [#allocation3], 1 }
 0x339   :  { %486 = vsyncpa [#allocation3 + $0x1], 1 }
 0x33a   :  { %487 = vsyncpa [#allocation6], 1 }
 0x33b   :  { %488 = vsyncpa [#allocation4], 1 }
 0x33c   :  { %490 = vsyncpa [#allocation4 + $0x1], 1 }

</bundles_post_ra>
